<compile_context>
chip_gen: v6e
topology: v6e:2x2x1
jax: 0.10.0
libtpu: 0.0.40
codegen_flags: <defaults>
</compile_context>

<pallas_src>
import functools

import jax
import jax.numpy as jnp
import numpy as np
from jax.experimental import pallas as pl
from jax.experimental.pallas import tpu as pltpu  # noqa: F401  (TPU backend)


def pack_actor_params(w1, b1, w2, b2):
    """One-time parameter prep (hoisted out of the per-call path).

    w1: (H, S) PyTorch fc1.weight, b1: (H,), w2: (A, H) fc2.weight, b2: (A,)
    Returns a single f32 slab of shape (rows, 128) with rows % 8 == 0.
    """
    H, S = w1.shape
    A = w2.shape[0]
    assert H <= 128 and A <= 128, "hidden/action dims must fit one lane row"
    rows = ((S + A + 2 + 7) // 8) * 8
    slab = jnp.zeros((rows, 128), jnp.float32)
    slab = slab.at[0:S, 0:H].set(jnp.asarray(w1, jnp.float32).T)       # w1^T
    slab = slab.at[S, 0:H].set(jnp.asarray(b1, jnp.float32))           # b1
    slab = slab.at[S + 1:S + 1 + A, 0:H].set(jnp.asarray(w2, jnp.float32))  # w2
    slab = slab.at[S + 1 + A, 0:A].set(jnp.asarray(b2, jnp.float32))   # b2
    return slab


def make_actor_forward(state_dim, hidden, action_dim):
    """Builds a jitted forward(x, params_slab) -> (B, A) softmax probs."""
    S, H, A = state_dim, hidden, action_dim
    rows = ((S + A + 2 + 7) // 8) * 8

    def actor_kernel(x_ref, p_ref, o_ref):
        # x: (B, S)   p: (rows, 128)   o: (B, A)
        x = x_ref[...]
        p = p_ref[...]

        # ---- fc1 + ReLU : VPU broadcast-MAC over the S=4 state features ----
        h = p[S:S + 1, 0:H]                                  # b1, (1, H)
        for s in range(S):                                   # unrolled, tiny
            h = h + x[:, s:s + 1] * p[s:s + 1, 0:H]          # (B,1)*(1,H)->(B,H)
        h = jnp.maximum(h, 0.0)                              # (B, H)

        # ---- fc2 : elementwise multiply + lane-reduce per output column ----
        cols = []
        for a in range(A):                                   # A = 2, unrolled
            w2a = p[S + 1 + a:S + 2 + a, 0:H]                # (1, H)
            b2a = p[S + 1 + A:S + 2 + A, a:a + 1]            # (1, 1)
            cols.append(jnp.sum(h * w2a, axis=-1, keepdims=True) + b2a)
        logits = jnp.concatenate(cols, axis=-1)              # (B, A)

        # ---- softmax over dim=0 (batch axis), exactly like the reference ----
        m = jnp.max(logits, axis=0, keepdims=True)
        e = jnp.exp(logits - m)
        denom = jnp.sum(e, axis=0, keepdims=True)
        o_ref[...] = (e / denom).astype(o_ref.dtype)         # exact divide

    full = lambda shape: pl.BlockSpec(shape, lambda: tuple(0 for _ in shape))

    @jax.jit
    def forward(x, params):
        B = x.shape[0]
        return pl.pallas_call(
            actor_kernel,
            out_shape=jax.ShapeDtypeStruct((B, A), jnp.float32),
            in_specs=[full((B, S)), full((rows, 128))],
            out_specs=full((B, A)),
        )(x, params)

    return forward


def xavier_uniform(key, shape):
    # shape is (fan_out, fan_in) -- PyTorch nn.Linear weight layout.
    fan_out, fan_in = shape
    bound = float(np.sqrt(6.0 / (fan_in + fan_out)))
    return jax.random.uniform(key, shape, jnp.float32, -bound, bound)


def linear_bias_init(key, fan_in, fan_out):
    # PyTorch default nn.Linear bias init: U(-1/sqrt(fan_in), 1/sqrt(fan_in))
    bound = float(1.0 / np.sqrt(fan_in))
    return jax.random.uniform(key, (fan_out,), jnp.float32, -bound, bound)


if __name__ == "__main__":
    # CartPole-like setup: state_shape = (4,), action_shape = 2
    state_dim = 4
    hidden = 24
    action_dim = 2
    batch = 8

    key = jax.random.PRNGKey(0)
    kx, k1, k2, kb1, kb2 = jax.random.split(key, 5)

    x = jax.random.normal(kx, (batch, state_dim), jnp.float32)
    w1 = xavier_uniform(k1, (hidden, state_dim))           # fc1.weight
    b1 = linear_bias_init(kb1, state_dim, hidden)          # fc1.bias
    w2 = xavier_uniform(k2, (action_dim, hidden))          # fc2.weight
    b2 = linear_bias_init(kb2, hidden, action_dim)         # fc2.bias

    # One-time parameter prep (kept resident / reused across calls).
    params = jax.block_until_ready(pack_actor_params(w1, b1, w2, b2))
    actor_forward = make_actor_forward(state_dim, hidden, action_dim)

    out = actor_forward(x, params)
    out = jax.block_until_ready(out)

    # Pure-JAX reference check (same semantics as the PyTorch forward).
    h_ref = jnp.maximum(x @ w1.T + b1, 0.0)
    logits_ref = h_ref @ w2.T + b2
    ref = jax.nn.softmax(logits_ref, axis=0)   # NOTE: dim=0 as in the source model
    np.testing.assert_allclose(np.asarray(out), np.asarray(ref), rtol=1e-5, atol=1e-5)

    assert out.shape == (batch, action_dim)
    print("KERNEL_OK")
</pallas_src>

<mosaic_0001>
module attributes {stable_mosaic.version = 11 : i64} {
  func.func @actor_kernel(%arg0: memref<8x4xf32, #tpu.memory_space<vmem>>, %arg1: memref<8x128xf32, #tpu.memory_space<vmem>>, %arg2: memref<8x2xf32, #tpu.memory_space<vmem>>) attributes {dimension_semantics = [], scalar_prefetch = 0 : i64, scratch_operands = 0 : i64, tpu.core_type = #tpu.core_type<tc>} {
    %c0 = arith.constant 0 : index
    %c0_0 = arith.constant 0 : index
    %0 = vector.load %arg0[%c0, %c0_0] : memref<8x4xf32, #tpu.memory_space<vmem>>, vector<8x4xf32>
    %c0_1 = arith.constant 0 : index
    %c0_2 = arith.constant 0 : index
    %1 = vector.load %arg1[%c0_1, %c0_2] : memref<8x128xf32, #tpu.memory_space<vmem>>, vector<8x128xf32>
    %2 = vector.extract_strided_slice %1 {offsets = [4, 0], sizes = [1, 24], strides = [1, 1]} : vector<8x128xf32> to vector<1x24xf32>
    %3 = vector.extract_strided_slice %0 {offsets = [0, 0], sizes = [8, 1], strides = [1, 1]} : vector<8x4xf32> to vector<8x1xf32>
    %4 = vector.extract_strided_slice %1 {offsets = [0, 0], sizes = [1, 24], strides = [1, 1]} : vector<8x128xf32> to vector<1x24xf32>
    %5 = vector.broadcast %3 : vector<8x1xf32> to vector<8x24xf32>
    %6 = vector.broadcast %4 : vector<1x24xf32> to vector<8x24xf32>
    %7 = arith.mulf %5, %6 : vector<8x24xf32>
    %8 = vector.broadcast %2 : vector<1x24xf32> to vector<8x24xf32>
    %9 = arith.addf %8, %7 : vector<8x24xf32>
    %10 = vector.extract_strided_slice %0 {offsets = [0, 1], sizes = [8, 1], strides = [1, 1]} : vector<8x4xf32> to vector<8x1xf32>
    %11 = vector.extract_strided_slice %1 {offsets = [1, 0], sizes = [1, 24], strides = [1, 1]} : vector<8x128xf32> to vector<1x24xf32>
    %12 = vector.broadcast %10 : vector<8x1xf32> to vector<8x24xf32>
    %13 = vector.broadcast %11 : vector<1x24xf32> to vector<8x24xf32>
    %14 = arith.mulf %12, %13 : vector<8x24xf32>
    %15 = arith.addf %9, %14 : vector<8x24xf32>
    %16 = vector.extract_strided_slice %0 {offsets = [0, 2], sizes = [8, 1], strides = [1, 1]} : vector<8x4xf32> to vector<8x1xf32>
    %17 = vector.extract_strided_slice %1 {offsets = [2, 0], sizes = [1, 24], strides = [1, 1]} : vector<8x128xf32> to vector<1x24xf32>
    %18 = vector.broadcast %16 : vector<8x1xf32> to vector<8x24xf32>
    %19 = vector.broadcast %17 : vector<1x24xf32> to vector<8x24xf32>
    %20 = arith.mulf %18, %19 : vector<8x24xf32>
    %21 = arith.addf %15, %20 : vector<8x24xf32>
    %22 = vector.extract_strided_slice %0 {offsets = [0, 3], sizes = [8, 1], strides = [1, 1]} : vector<8x4xf32> to vector<8x1xf32>
    %23 = vector.extract_strided_slice %1 {offsets = [3, 0], sizes = [1, 24], strides = [1, 1]} : vector<8x128xf32> to vector<1x24xf32>
    %24 = vector.broadcast %22 : vector<8x1xf32> to vector<8x24xf32>
    %25 = vector.broadcast %23 : vector<1x24xf32> to vector<8x24xf32>
    %26 = arith.mulf %24, %25 : vector<8x24xf32>
    %27 = arith.addf %21, %26 : vector<8x24xf32>
    %cst = arith.constant 0.000000e+00 : f32
    %28 = vector.broadcast %cst : f32 to vector<8x24xf32>
    %29 = arith.maximumf %27, %28 : vector<8x24xf32>
    %30 = vector.extract_strided_slice %1 {offsets = [5, 0], sizes = [1, 24], strides = [1, 1]} : vector<8x128xf32> to vector<1x24xf32>
    %31 = vector.extract_strided_slice %1 {offsets = [7, 0], sizes = [1, 1], strides = [1, 1]} : vector<8x128xf32> to vector<1x1xf32>
    %32 = vector.broadcast %30 : vector<1x24xf32> to vector<8x24xf32>
    %33 = arith.mulf %29, %32 : vector<8x24xf32>
    %cst_3 = arith.constant dense<0.000000e+00> : vector<8xf32>
    %34 = vector.multi_reduction <add>, %33, %cst_3 [1] : vector<8x24xf32> to vector<8xf32>
    %35 = vector.shape_cast %34 : vector<8xf32> to vector<8x1xf32>
    %36 = vector.broadcast %31 : vector<1x1xf32> to vector<8x1xf32>
    %37 = arith.addf %35, %36 : vector<8x1xf32>
    %38 = vector.extract_strided_slice %1 {offsets = [6, 0], sizes = [1, 24], strides = [1, 1]} : vector<8x128xf32> to vector<1x24xf32>
    %39 = vector.extract_strided_slice %1 {offsets = [7, 1], sizes = [1, 1], strides = [1, 1]} : vector<8x128xf32> to vector<1x1xf32>
    %40 = vector.broadcast %38 : vector<1x24xf32> to vector<8x24xf32>
    %41 = arith.mulf %29, %40 : vector<8x24xf32>
    %cst_4 = arith.constant dense<0.000000e+00> : vector<8xf32>
    %42 = vector.multi_reduction <add>, %41, %cst_4 [1] : vector<8x24xf32> to vector<8xf32>
    %43 = vector.shape_cast %42 : vector<8xf32> to vector<8x1xf32>
    %44 = vector.broadcast %39 : vector<1x1xf32> to vector<8x1xf32>
    %45 = arith.addf %43, %44 : vector<8x1xf32>
    %46 = tpu.concatenate %37, %45 in 1 : vector<8x1xf32>, vector<8x1xf32> -> vector<8x2xf32>
    %cst_5 = arith.constant dense<0xFF800000> : vector<2xf32>
    %47 = vector.multi_reduction <maximumf>, %46, %cst_5 [0] : vector<8x2xf32> to vector<2xf32>
    %48 = vector.shape_cast %47 : vector<2xf32> to vector<1x2xf32>
    %49 = vector.broadcast %48 : vector<1x2xf32> to vector<8x2xf32>
    %50 = arith.subf %46, %49 : vector<8x2xf32>
    %51 = math.exp %50 : vector<8x2xf32>
    %cst_6 = arith.constant dense<0.000000e+00> : vector<2xf32>
    %52 = vector.multi_reduction <add>, %51, %cst_6 [0] : vector<8x2xf32> to vector<2xf32>
    %53 = vector.shape_cast %52 : vector<2xf32> to vector<1x2xf32>
    %54 = vector.broadcast %53 : vector<1x2xf32> to vector<8x2xf32>
    %55 = arith.divf %51, %54 : vector<8x2xf32>
    %c0_7 = arith.constant 0 : index
    %c0_8 = arith.constant 0 : index
    %56 = vector.load %arg2[%c0_7, %c0_8] : memref<8x2xf32, #tpu.memory_space<vmem>>, vector<8x2xf32>
    tpu.vector_store %arg2[%c0_7, %c0_8], %55 {strides = array<i32>} : memref<8x2xf32, #tpu.memory_space<vmem>>, vector<8x2xf32>,
    return
  }
}

</mosaic_0001>

<bundles_post_ra>
// kernel: forward.1
= control target key start
LH: loop header
LB: loop body
LE: loop exit
PB: predicated region body
PF: predicated region fallthrough
CT: control target
= control target key end

     0   :  { %v122_v0 = vmov 0   ;;  %v123_v2 = vmov 2   ;;  %v124_v3 = vmov 1   ;;  %v125_v4 = vmov 3   ;;  %s153_s0 = inlined_call_operand.vmem [shape: f32[8,4], index: 0, kind: input, shape index: {}]   ;;  %s154_s1 = inlined_call_operand.vmem [shape: f32[8,128], index: 1, kind: input, shape index: {}]   ;;  %s155_s2 = inlined_call_operand.vmem [shape: f32[8,2], index: 2, kind: output, shape index: {}]  }
   0x1   :  { %113 = vset.pattern.permute.xlu0 %v122_v0  ;;  %v11_v1 = vld [vmem:[%s153_s0] sm:$0xff]  ;;  %115 = vset.pattern.permute.xlu1 %v123_v2  ;;  %v18_v5 = vlaneseq  ;;  %vm64_vm0 = vcmask 195584   ;;  %vm82_vm1 = vcmask 7168   ;;  %vm84_vm2 = vcmask 15360  }
   0x2   :  { %15 = vperm.xlu0 %113, %v11_v1   ;;  %39 = vperm.xlu1 %115, %v11_v1   ;;  %v12_v8 = vld [vmem:[%s154_s1] sm:$0xff] }
   0x3   :  { %v19_v6 = vshrl.u32 %v18_v5, 7 }
   0x5   :  { %v70_v7 = vsub.s32 7, %v19_v6  ;;  %v20_v10 = vsub.s32 0, %v19_v6  ;;  %v25_v12 = vsub.s32 4, %v19_v6  ;;  %v34_v13 = vsub.s32 1, %v19_v6 }
   0x6   :  { %114 = vset.pattern.permute.xlu0 %v124_v3  ;;  %116 = vset.pattern.permute.xlu1 %v125_v4  ;;  %v44_v15 = vsub.s32 2, %v19_v6  ;;  %v54_v17 = vsub.s32 3, %v19_v6  ;;  %v75_v27 = vsub.s32 6, %v19_v6  ;;  %v61_v31 = vsub.s32 5, %v19_v6 }
   0x7   :  { %29 = vperm.xlu0 %114, %v11_v1   ;;  %49 = vperm.xlu1 %116, %v11_v1   ;;  %v71_v9 = vrot.slane %v12_v8, %v70_v7  ;;  %v21_v11 = vrot.slane %v12_v8, %v20_v10  ;;  %v26_v18 = vrot.slane %v12_v8, %v25_v12 }
   0x8   :  { %v35_v20 = vrot.slane %v12_v8, %v34_v13  ;;  %v45_v21 = vrot.slane %v12_v8, %v44_v15  ;;  %v55_v22 = vrot.slane %v12_v8, %v54_v17  ;;  %v76_v34 = vrot.slane %v12_v8, %v75_v27 }
   0x9   :  { %v62_v35 = vrot.slane %v12_v8, %v61_v31 }
   0xb   :  { %117 = vset.pattern.permute.xlu0 %v125_v4 }
  0x7d   :  { %v16_v14 = vpop.permute.xlu0 %15  ;;  %v40_v16 = vpop.permute.xlu1 %39 }
  0x7e   :  { %v22_v19 = vmul.f32 %v21_v11, %v16_v14  ;;  %v46_v28 = vmul.f32 %v45_v21, %v40_v16 }
  0x80   :  { %v27_v25 = vadd.f32 %v26_v18, %v22_v19 }
  0x82   :  { %v30_v23 = vpop.permute.xlu0 %29  ;;  %v50_v24 = vpop.permute.xlu1 %49 }
  0x83   :  { %v36_v26 = vmul.f32 %v35_v20, %v30_v23  ;;  %v56_v30 = vmul.f32 %v55_v22, %v50_v24 }
  0x85   :  { %v37_v29 = vadd.f32 %v36_v26, %v27_v25 }
  0x87   :  { %v47_v32 = vadd.f32 %v46_v28, %v37_v29 }
  0x89   :  { %v57_v33 = vadd.f32 %v56_v30, %v47_v32 }
  0x8b   :  { %v58_v36 = vmax.f32 %v57_v33, 0.0 }
  0x8d   :  { %v77_v37 = vmul.f32 %v76_v34, %v58_v36  ;;  %v63_v38 = vmul.f32 %v62_v35, %v58_v36 }
  0x8f   :  { %v78_v39 = vsel %vm64_vm0, %v77_v37, 0.0  ;;  %v65_v40 = vsel %vm64_vm0, %v63_v38, 0.0 }
  0x90   :  { %79 = vadd.xlane.f32.xlu0 %v78_v39  ;;  %66 = vadd.xlane.f32.xlu1 %v65_v40 }
 0x119   :  { %v80_v41 = vpop.xlane.xlu0 %79  ;;  %v67_v42 = vpop.xlane.xlu1 %66 }
 0x11a   :  { %v81_v43 = vadd.f32 %v80_v41, %v71_v9  ;;  %v72_v44 = vadd.f32 %v71_v9, %v67_v42 }
 0x11c   :  { %v83_v45 = vsel %vm82_vm1, %v72_v44, %v81_v43 }
 0x11d   :  { %v85_v46 = vsel %vm84_vm2, %v83_v45, -inf }
 0x11e   :  { %v86_v47 = vrot.slane %v85_v46, 4 }
 0x120   :  { %v87_v48 = vmax.f32 %v85_v46, %v86_v47 }
 0x122   :  { %v88_v49 = vrot.slane %v87_v48, 2 }
 0x124   :  { %v89_v50 = vmax.f32 %v87_v48, %v88_v49 }
 0x126   :  { %v90_v51 = vrot.slane %v89_v50, 1 }
 0x128   :  { %v91_v52 = vmax.f32 %v89_v50, %v90_v51 }
 0x12a   :  { %v92_v53 = vsub.f32 %v83_v45, %v91_v52 }
 0x12c   :  { %v93_v54 = vmul.f32 1.442695, %v92_v53 }
 0x12e   :  { %118 = vpow2.f32 %v93_v54 }
 0x13b   :  { %v119_v55 = vpop.eup %118 }
 0x13c   :  { %v95_v56 = vsel %vm84_vm2, %v119_v55, 0.0 }
 0x13d   :  { %v96_v57 = vrot.slane %v95_v56, 4 }
 0x13f   :  { %v97_v58 = vadd.f32 %v96_v57, %v95_v56 }
 0x141   :  { %v98_v59 = vrot.slane %v97_v58, 2 }
 0x143   :  { %v99_v60 = vadd.f32 %v98_v59, %v97_v58 }
 0x145   :  { %v100_v61 = vrot.slane %v99_v60, 1 }
 0x147   :  { %v101_v62 = vadd.f32 %v100_v61, %v99_v60 }
 0x149   :  { %120 = vrcp.f32 %v101_v62 }
 0x156   :  { %v121_v63 = vpop.eup %120 }
 0x157   :  { %v103_v0 = vmul.f32 %v121_v63, %v119_v55 }
 0x159   :  { %104 = vst.msk [vmem:[%s155_s2] sm:$0xff] %vm84_vm2, %v103_v0 }

</bundles_post_ra>
